<compile_context>
chip_gen: v7x
topology: tpu7x:2x2x1
jax: 0.10.0
libtpu: 0.0.40
codegen_flags: <defaults>
</compile_context>

<pallas_src>
import functools

import jax
import jax.numpy as jnp
import numpy as np
from jax.experimental import pallas as pl
from jax.experimental.pallas import tpu as pltpu

_ATTN_FEATS = 96    # attn Linear out_features (fixed by the module)
_ATTN_PAD = 128     # attn section padded to a full lane tile inside w_in
_HEAD_PAD = 128     # fused [actions_fc | targets_fc] head padded to a full lane tile


# ----------------------------- Pallas kernel -----------------------------
def _decoder_kernel(x_ref, h0_ref, c0_ref, enc_ref, w_in_ref, w_out_ref,
                    preds_ref, hc_ref, hc_s):
    """One decode step per grid index t; (h, c) carried in VMEM scratch."""
    t = pl.program_id(0)
    H = h0_ref.shape[-1]
    W = x_ref.shape[-1]          # padded x width (real feats + ones/bias column)

    # Load the initial recurrent state once (first grid step only).
    @pl.when(t == 0)
    def _():
        hc_s[0] = h0_ref[...]
        hc_s[1] = c0_ref[...]

    x = x_ref[0]                 # (B, W); column `natm` is 1.0 -> activates bias row
    h_prev = hc_s[0]             # (B, H)
    c_prev = hc_s[1]             # (B, H)

    # Fused matmul: [attn(cat(x, h_prev)) + b_attn | pad | x @ w_ih^T + b_ih+b_hh].
    # The torch concat is realised as two dots on aligned row-slices of w_in
    # (h rows of the gate section are zero; the x bias row carries both biases).
    fused = (jnp.dot(x, w_in_ref[0:W, :], preferred_element_type=jnp.float32)
             + jnp.dot(h_prev, w_in_ref[W:W + H, :],
                       preferred_element_type=jnp.float32))            # (B, 128 + 4H)
    logits = fused[:, 0:_ATTN_FEATS]                                   # (B, 96)
    gates_x = fused[:, _ATTN_PAD:_ATTN_PAD + 4 * H]                    # (B, 4H)

    # Legacy F.softmax with no dim on a 3-D (B,1,96) tensor -> softmax over dim 0 (batch).
    m = jnp.max(logits, axis=0, keepdims=True)
    e = jnp.exp(logits - m)
    attn_w = e * pl.reciprocal(jnp.sum(e, axis=0, keepdims=True), approx=False)

    # bmm(enc.reshape(B,H,96), attn_w.reshape(B,96,1)) -> (B, H); LSTM hidden input.
    h_att = jnp.sum(enc_ref[...] * attn_w[:, None, :], axis=-1)        # (B, H)

    # Single-layer, single-step LSTM (PyTorch gate order i, f, g, o).
    gates = gates_x + jnp.dot(h_att, w_out_ref[0:H, 0:4 * H],
                              preferred_element_type=jnp.float32)
    i = jax.nn.sigmoid(gates[:, 0:H])
    f = jax.nn.sigmoid(gates[:, H:2 * H])
    g = jnp.tanh(gates[:, 2 * H:3 * H])
    o = jax.nn.sigmoid(gates[:, 3 * H:4 * H])
    c1 = f * c_prev + i * g
    h1 = o * jnp.tanh(c1)

    # Fused 128-lane-padded heads: [actions_fc | targets_fc | 0...]; one
    # lane-dense (unmasked) store per step. Head bias is the extra row of w_out.
    preds_ref[0] = (jnp.dot(h1, w_out_ref[0:H, 4 * H:4 * H + _HEAD_PAD],
                            preferred_element_type=jnp.float32)
                    + w_out_ref[H:H + 1, 4 * H:4 * H + _HEAD_PAD])

    # Carry the recurrent state; emit packed [hn ; cn] only on the last step.
    hc_s[0] = h1
    hc_s[1] = c1

    @pl.when(t == pl.num_programs(0) - 1)
    def _():
        hc_ref[0] = h1
        hc_ref[1] = c1


# ----------------------------- pallas_call builder -----------------------
def _run_decoder_kernel(w_in, w_out, xs_pad, h0, c0, enc_r):
    T, B, W = xs_pad.shape
    H = h0.shape[-1]
    grid_spec = pltpu.PrefetchScalarGridSpec(
        num_scalar_prefetch=0,
        grid=(T,),
        in_specs=[
            pl.BlockSpec((1, B, W), lambda t: (t, 0, 0)),              # per-step x
            pl.BlockSpec((B, H), lambda t: (0, 0)),                    # initial h (resident)
            pl.BlockSpec((B, H), lambda t: (0, 0)),                    # initial c (resident)
            pl.BlockSpec((B, H, _ATTN_FEATS), lambda t: (0, 0, 0)),    # encoder outputs (resident)
            pl.BlockSpec(w_in.shape, lambda t: (0, 0)),                # fused attn + input-gate weight
            pl.BlockSpec(w_out.shape, lambda t: (0, 0)),               # fused hidden-gate + head weight
        ],
        out_specs=[
            pl.BlockSpec((1, B, _HEAD_PAD), lambda t: (t, 0, 0)),      # per-step head logits
            pl.BlockSpec((2, B, H), lambda t: (0, 0, 0)),              # packed [hn ; cn] (last step)
        ],
        scratch_shapes=[pltpu.VMEM((2, B, H), jnp.float32)],           # carried (h, c)
    )
    return pl.pallas_call(
        _decoder_kernel,
        out_shape=(jax.ShapeDtypeStruct((T, B, _HEAD_PAD), jnp.float32),
                   jax.ShapeDtypeStruct((2, B, H), jnp.float32)),
        grid_spec=grid_spec,
        compiler_params=pltpu.CompilerParams(dimension_semantics=("arbitrary",)),
    )(xs_pad, h0, c0, enc_r, w_in, w_out)


# ----------------------- one-time parameter packing ------------------------
def prepare_decoder_params(params):
    """Pack the torch-layout params into the kernel layout ONCE (not per call)."""
    H = int(params["hidden_size"])
    natm = int(params["w_ih"].shape[1])
    n_act = int(params["w_act"].shape[0])
    n_tgt = int(params["w_tgt"].shape[0])
    n_heads = n_act + n_tgt
    assert n_heads <= _HEAD_PAD and _ATTN_FEATS <= _ATTN_PAD

    W = int(-(-(natm + 1) // 8) * 8)          # padded x width (ones column at index natm)

    # w_in rows [0:natm]=x weights, row natm = fused bias row, rows [W:W+H]=h weights.
    # cols [0:96]=attn, [96:128]=pad, [128:128+4H]=input gates (x rows only).
    w_in = jnp.zeros((W + H, _ATTN_PAD + 4 * H), jnp.float32)
    w_attn_t = params["w_attn"].T.astype(jnp.float32)                  # (natm+H, 96) cat order = [x | h]
    w_in = w_in.at[0:natm, 0:_ATTN_FEATS].set(w_attn_t[0:natm])
    w_in = w_in.at[W:W + H, 0:_ATTN_FEATS].set(w_attn_t[natm:natm + H])
    w_in = w_in.at[0:natm, _ATTN_PAD:_ATTN_PAD + 4 * H].set(
        params["w_ih"].T.astype(jnp.float32))
    w_in = w_in.at[natm, 0:_ATTN_FEATS].set(params["b_attn"].astype(jnp.float32))
    w_in = w_in.at[natm, _ATTN_PAD:_ATTN_PAD + 4 * H].set(
        (params["b_ih"] + params["b_hh"]).astype(jnp.float32))

    # w_out rows [0:H]: cols [0:4H]=w_hh^T, cols [4H:4H+128]=[w_act^T | w_tgt^T | 0];
    # row H = head bias row.
    R = int(-(-(H + 1) // 8) * 8)
    w_out = jnp.zeros((R, 4 * H + _HEAD_PAD), jnp.float32)
    w_out = w_out.at[0:H, 0:4 * H].set(params["w_hh"].T.astype(jnp.float32))
    head_w = jnp.concatenate([params["w_act"].T, params["w_tgt"].T],
                             axis=1).astype(jnp.float32)
    w_out = w_out.at[0:H, 4 * H:4 * H + n_heads].set(head_w)
    head_b = jnp.concatenate([params["b_act"], params["b_tgt"]]).astype(jnp.float32)
    w_out = w_out.at[H, 4 * H:4 * H + n_heads].set(head_b)

    return {"hidden_size": H, "natm": natm, "n_act": n_act, "n_tgt": n_tgt,
            "x_width": W, "w_in": w_in, "w_out": w_out}


# ----------------------------- jitted wrappers ------------------------------
@functools.partial(jax.jit, static_argnames=("n_act", "n_tgt"))
def _decoder_forward_jit(w_in, w_out, x, hidden_state, internal_state,
                         encoder_outputs, *, n_act, n_tgt):
    B, L, natm = x.shape
    H = hidden_state.shape[-1]
    W = w_in.shape[0] - H
    x_pad = (jnp.zeros((B, W), jnp.float32)
             .at[:, :natm].set(x.reshape(B, natm).astype(jnp.float32))
             .at[:, natm].set(1.0))                                     # ones col -> bias row
    enc_r = encoder_outputs.reshape(B, -1, _ATTN_FEATS)                 # torch C-order reshape
    preds, hc = _run_decoder_kernel(w_in, w_out, x_pad[None],
                                    hidden_state.reshape(B, H),
                                    internal_state.reshape(B, H), enc_r)
    action_pred = preds[0, :, :n_act]
    target_pred = preds[0, :, n_act:n_act + n_tgt]
    return action_pred, target_pred, hc[0:1], hc[1:2]


@functools.partial(jax.jit, static_argnames=("n_act", "n_tgt"))
def _decoder_decode_jit(w_in, w_out, xs, hidden_state, internal_state,
                        encoder_outputs, *, n_act, n_tgt):
    T, B, natm = xs.shape
    H = hidden_state.shape[-1]
    W = w_in.shape[0] - H
    xs_pad = (jnp.zeros((T, B, W), jnp.float32)
              .at[:, :, :natm].set(xs.astype(jnp.float32))
              .at[:, :, natm].set(1.0))
    enc_r = encoder_outputs.reshape(B, -1, _ATTN_FEATS)                 # hoisted: once per sequence
    preds, hc = _run_decoder_kernel(w_in, w_out, xs_pad,
                                    hidden_state.reshape(B, H),
                                    internal_state.reshape(B, H), enc_r)
    return (preds[:, :, :n_act], preds[:, :, n_act:n_act + n_tgt],
            hc[0:1], hc[1:2])


def decoder_forward(prep, x, hidden_state, internal_state, encoder_outputs):
    """Pallas equivalent of Decoder.forward (seq_len = 1, num_layers = 1)."""
    assert x.shape[1] == 1 and x.shape[2] == prep["natm"]
    return _decoder_forward_jit(prep["w_in"], prep["w_out"], x, hidden_state,
                                internal_state, encoder_outputs,
                                n_act=prep["n_act"], n_tgt=prep["n_tgt"])


def decoder_decode(prep, xs, hidden_state, internal_state, encoder_outputs):
    """Fused T-step teacher-forced decode: one pallas_call for the whole loop."""
    return _decoder_decode_jit(prep["w_in"], prep["w_out"], xs, hidden_state,
                               internal_state, encoder_outputs,
                               n_act=prep["n_act"], n_tgt=prep["n_tgt"])


# ----------------------------- pure-JAX reference --------------------------
def decoder_forward_ref(params, x, hidden_state, internal_state, encoder_outputs):
    B, L, natm = x.shape
    H = params["hidden_size"]
    x2 = x.reshape(B, natm).astype(jnp.float32)
    h_prev = hidden_state.reshape(B, L, H)
    cat = jnp.concatenate([x, h_prev], axis=-1)                          # (B, 1, natm+H)
    logits = cat @ params["w_attn"].T + params["b_attn"]                 # (B, 1, 96)
    attn_w = jax.nn.softmax(logits, axis=0)                              # legacy dim=0 (batch)
    attn_applied = jnp.einsum("bhk,bko->bho",
                              encoder_outputs.reshape(B, -1, 96),
                              attn_w.reshape(B, 96, 1))                  # (B, H, 1)
    h0 = attn_applied.reshape(1, B, -1)[0]                               # (B, H)
    gates = x2 @ params["w_ih"].T + params["b_ih"] + h0 @ params["w_hh"].T + params["b_hh"]
    i = jax.nn.sigmoid(gates[:, 0:H]);  f = jax.nn.sigmoid(gates[:, H:2*H])
    g = jnp.tanh(gates[:, 2*H:3*H]);    o = jax.nn.sigmoid(gates[:, 3*H:4*H])
    c1 = f * internal_state.reshape(B, H) + i * g
    h1 = o * jnp.tanh(c1)
    act = h1 @ params["w_act"].T + params["b_act"]
    tgt = h1 @ params["w_tgt"].T + params["b_tgt"]
    return act, tgt, h1.reshape(1, B, H), c1.reshape(1, B, H)


def decoder_decode_ref(params, xs, hidden_state, internal_state, encoder_outputs):
    h, c = hidden_state, internal_state
    acts, tgts = [], []
    for t in range(xs.shape[0]):
        a, tg, h, c = decoder_forward_ref(params, xs[t][:, None, :], h, c, encoder_outputs)
        acts.append(a); tgts.append(tg)
    return jnp.stack(acts), jnp.stack(tgts), h, c


# ----------------------------- setup / main ---------------------------------
def make_params(key, hidden_size, num_actions, num_targets):
    natm = num_actions + num_targets + 6
    H = hidden_size
    ks = jax.random.split(key, 10)

    def u(k, shape, fan_in):
        bound = 1.0 / np.sqrt(fan_in)
        return jax.random.uniform(k, shape, jnp.float32, -bound, bound)

    return {
        "hidden_size": H,
        "w_attn": u(ks[0], (96, natm + H), natm + H),
        "b_attn": u(ks[1], (96,), natm + H),
        "w_ih": u(ks[2], (4 * H, natm), H),
        "w_hh": u(ks[3], (4 * H, H), H),
        "b_ih": u(ks[4], (4 * H,), H),
        "b_hh": u(ks[5], (4 * H,), H),
        "w_act": u(ks[6], (num_actions + 3, H), H),
        "b_act": u(ks[7], (num_actions + 3,), H),
        "w_tgt": u(ks[8], (num_targets + 3, H), H),
        "b_tgt": u(ks[9], (num_targets + 3,), H),
    }


if __name__ == "__main__":
    B, H, num_layers = 2, 32, 1
    num_actions, num_targets = 4, 5
    natm = num_actions + num_targets + 6          # 15

    key = jax.random.PRNGKey(0)
    kp, kx, kh, kc, ke, ks = jax.random.split(key, 6)
    params = make_params(kp, H, num_actions, num_targets)
    prep = prepare_decoder_params(params)         # one-time weight packing (hot path stays clean)

    x = jax.random.normal(kx, (B, 1, natm), jnp.float32)                 # (batch, seq=1, natm)
    hidden_state = jax.random.normal(kh, (num_layers, B, H), jnp.float32)
    internal_state = jax.random.normal(kc, (num_layers, B, H), jnp.float32)
    encoder_outputs = jax.random.normal(ke, (B, 96, H), jnp.float32)     # size(1) must be 96

    # --- module-faithful single step (grid=(1,)) ---
    out = jax.block_until_ready(
        decoder_forward(prep, x, hidden_state, internal_state, encoder_outputs))
    ref = decoder_forward_ref(params, x, hidden_state, internal_state, encoder_outputs)
    for a, b in zip(out, ref):
        np.testing.assert_allclose(np.asarray(a), np.asarray(b), rtol=2e-5, atol=2e-5)

    # --- fused T-step decode loop: one pallas_call, weights resident, (h,c) in VMEM ---
    T = 8
    xs = jax.random.normal(ks, (T, B, natm), jnp.float32)
    dec = jax.block_until_ready(
        decoder_decode(prep, xs, hidden_state, internal_state, encoder_outputs))
    ref_dec = decoder_decode_ref(params, xs, hidden_state, internal_state, encoder_outputs)
    for a, b in zip(dec, ref_dec):
        np.testing.assert_allclose(np.asarray(a), np.asarray(b), rtol=1e-4, atol=1e-4)

    print("KERNEL_OK")
</pallas_src>

<mosaic_0001>
module attributes {stable_mosaic.version = 11 : i64} {
  func.func @_decoder_kernel(%arg0: i32, %arg1: memref<1x2x16xf32, #tpu.memory_space<vmem>>, %arg2: memref<2x32xf32, #tpu.memory_space<vmem>>, %arg3: memref<2x32xf32, #tpu.memory_space<vmem>>, %arg4: memref<2x32x96xf32, #tpu.memory_space<vmem>>, %arg5: memref<48x256xf32, #tpu.memory_space<vmem>>, %arg6: memref<40x256xf32, #tpu.memory_space<vmem>>, %arg7: memref<1x2x128xf32, #tpu.memory_space<vmem>>, %arg8: memref<2x2x32xf32, #tpu.memory_space<vmem>>, %arg9: memref<2x2x32xf32, #tpu.memory_space<vmem>>) attributes {dimension_semantics = [#tpu.dimension_semantics<arbitrary>], iteration_bounds = array<i64: 1>, scalar_prefetch = 0 : i64, scratch_operands = 1 : i64, tpu.core_type = #tpu.core_type<tc>, window_params = [{transform_indices = @transform_0, window_bounds = array<i64: 1, 2, 16>}, {pipeline_mode = #tpu.pipeline_mode<synchronous>, transform_indices = @transform_1, window_bounds = array<i64: 2, 32>}, {pipeline_mode = #tpu.pipeline_mode<synchronous>, transform_indices = @transform_2, window_bounds = array<i64: 2, 32>}, {pipeline_mode = #tpu.pipeline_mode<synchronous>, transform_indices = @transform_3, window_bounds = array<i64: 2, 32, 96>}, {pipeline_mode = #tpu.pipeline_mode<synchronous>, transform_indices = @transform_4, window_bounds = array<i64: 48, 256>}, {pipeline_mode = #tpu.pipeline_mode<synchronous>, transform_indices = @transform_5, window_bounds = array<i64: 40, 256>}, {transform_indices = @transform_6, window_bounds = array<i64: 1, 2, 128>}, {pipeline_mode = #tpu.pipeline_mode<synchronous>, transform_indices = @transform_7, window_bounds = array<i64: 2, 2, 32>}]} {
    %c0_i32 = arith.constant 0 : i32
    %0 = arith.cmpi eq, %arg0, %c0_i32 : i32
    %1 = arith.extui %0 : i1 to i32
    %c0_i32_0 = arith.constant 0 : i32
    %2 = arith.cmpi ne, %1, %c0_i32_0 : i32
    scf.if %2 {
      %c0_38 = arith.constant 0 : index
      %c0_39 = arith.constant 0 : index
      %76 = vector.load %arg2[%c0_38, %c0_39] : memref<2x32xf32, #tpu.memory_space<vmem>>, vector<2x32xf32>
      %c0_40 = arith.constant 0 : index
      %c0_41 = arith.constant 0 : index
      %c0_42 = arith.constant 0 : index
      %77 = vector.load %arg9[%c0_40, %c0_41, %c0_42] : memref<2x2x32xf32, #tpu.memory_space<vmem>>, vector<1x2x32xf32>
      %78 = vector.shape_cast %77 : vector<1x2x32xf32> to vector<2x32xf32>
      %79 = vector.shape_cast %76 : vector<2x32xf32> to vector<1x2x32xf32>
      tpu.vector_store %arg9[%c0_40, %c0_41, %c0_42], %79 {strides = array<i32>} : memref<2x2x32xf32, #tpu.memory_space<vmem>>, vector<1x2x32xf32>,
      %c0_43 = arith.constant 0 : index
      %c0_44 = arith.constant 0 : index
      %80 = vector.load %arg3[%c0_43, %c0_44] : memref<2x32xf32, #tpu.memory_space<vmem>>, vector<2x32xf32>
      %c1_45 = arith.constant 1 : index
      %c0_46 = arith.constant 0 : index
      %c0_47 = arith.constant 0 : index
      %81 = vector.load %arg9[%c1_45, %c0_46, %c0_47] : memref<2x2x32xf32, #tpu.memory_space<vmem>>, vector<1x2x32xf32>
      %82 = vector.shape_cast %81 : vector<1x2x32xf32> to vector<2x32xf32>
      %83 = vector.shape_cast %80 : vector<2x32xf32> to vector<1x2x32xf32>
      tpu.vector_store %arg9[%c1_45, %c0_46, %c0_47], %83 {strides = array<i32>} : memref<2x2x32xf32, #tpu.memory_space<vmem>>, vector<1x2x32xf32>,
    } else {
    }
    %c0 = arith.constant 0 : index
    %c0_1 = arith.constant 0 : index
    %c0_2 = arith.constant 0 : index
    %3 = vector.load %arg1[%c0, %c0_1, %c0_2] : memref<1x2x16xf32, #tpu.memory_space<vmem>>, vector<1x2x16xf32>
    %4 = vector.shape_cast %3 : vector<1x2x16xf32> to vector<2x16xf32>
    %c0_3 = arith.constant 0 : index
    %c0_4 = arith.constant 0 : index
    %c0_5 = arith.constant 0 : index
    %5 = vector.load %arg9[%c0_3, %c0_4, %c0_5] : memref<2x2x32xf32, #tpu.memory_space<vmem>>, vector<1x2x32xf32>
    %6 = vector.shape_cast %5 : vector<1x2x32xf32> to vector<2x32xf32>
    %c1 = arith.constant 1 : index
    %c0_6 = arith.constant 0 : index
    %c0_7 = arith.constant 0 : index
    %7 = vector.load %arg9[%c1, %c0_6, %c0_7] : memref<2x2x32xf32, #tpu.memory_space<vmem>>, vector<1x2x32xf32>
    %8 = vector.shape_cast %7 : vector<1x2x32xf32> to vector<2x32xf32>
    %c0_8 = arith.constant 0 : index
    %c0_9 = arith.constant 0 : index
    %9 = vector.load %arg5[%c0_8, %c0_9] : memref<48x256xf32, #tpu.memory_space<vmem>>, vector<16x256xf32>
    %cst = arith.constant dense<0.000000e+00> : vector<2x256xf32>
    %10 = tpu.matmul %4, %9, %cst {dimension_numbers = #tpu.dot_dimension_numbers<[1], [0], [0], [1], [0, 0, 1, 1], [], []>} : vector<2x16xf32>, vector<16x256xf32>, vector<2x256xf32> -> vector<2x256xf32>
    %c16 = arith.constant 16 : index
    %c0_10 = arith.constant 0 : index
    %11 = vector.load %arg5[%c16, %c0_10] : memref<48x256xf32, #tpu.memory_space<vmem>>, vector<32x256xf32>
    %cst_11 = arith.constant dense<0.000000e+00> : vector<2x256xf32>
    %12 = tpu.matmul %6, %11, %cst_11 {dimension_numbers = #tpu.dot_dimension_numbers<[1], [0], [0], [1], [0, 0, 1, 1], [], []>} : vector<2x32xf32>, vector<32x256xf32>, vector<2x256xf32> -> vector<2x256xf32>
    %13 = arith.addf %10, %12 : vector<2x256xf32>
    %14 = vector.extract_strided_slice %13 {offsets = [0, 0], sizes = [2, 96], strides = [1, 1]} : vector<2x256xf32> to vector<2x96xf32>
    %15 = vector.extract_strided_slice %13 {offsets = [0, 128], sizes = [2, 128], strides = [1, 1]} : vector<2x256xf32> to vector<2x128xf32>
    %cst_12 = arith.constant dense<0xFF800000> : vector<96xf32>
    %16 = vector.multi_reduction <maximumf>, %14, %cst_12 [0] : vector<2x96xf32> to vector<96xf32>
    %17 = vector.shape_cast %16 : vector<96xf32> to vector<1x96xf32>
    %18 = vector.broadcast %17 : vector<1x96xf32> to vector<2x96xf32>
    %19 = arith.subf %14, %18 : vector<2x96xf32>
    %20 = math.exp %19 : vector<2x96xf32>
    %cst_13 = arith.constant dense<0.000000e+00> : vector<96xf32>
    %21 = vector.multi_reduction <add>, %20, %cst_13 [0] : vector<2x96xf32> to vector<96xf32>
    %22 = vector.shape_cast %21 : vector<96xf32> to vector<1x96xf32>
    %23 = tpu.reciprocal %22 : vector<1x96xf32> -> vector<1x96xf32>
    %24 = vector.broadcast %23 : vector<1x96xf32> to vector<2x96xf32>
    %25 = arith.mulf %20, %24 : vector<2x96xf32>
    %c0_14 = arith.constant 0 : index
    %c0_15 = arith.constant 0 : index
    %c0_16 = arith.constant 0 : index
    %26 = vector.load %arg4[%c0_14, %c0_15, %c0_16] : memref<2x32x96xf32, #tpu.memory_space<vmem>>, vector<2x32x96xf32>
    %27 = vector.shape_cast %25 : vector<2x96xf32> to vector<2x1x96xf32>
    %28 = vector.broadcast %27 : vector<2x1x96xf32> to vector<2x32x96xf32>
    %29 = arith.mulf %26, %28 : vector<2x32x96xf32>
    %cst_17 = arith.constant dense<0.000000e+00> : vector<2x32xf32>
    %30 = vector.multi_reduction <add>, %29, %cst_17 [2] : vector<2x32x96xf32> to vector<2x32xf32>
    %c0_18 = arith.constant 0 : index
    %c0_19 = arith.constant 0 : index
    %31 = vector.load %arg6[%c0_18, %c0_19] : memref<40x256xf32, #tpu.memory_space<vmem>>, vector<32x128xf32>
    %cst_20 = arith.constant dense<0.000000e+00> : vector<2x128xf32>
    %32 = tpu.matmul %30, %31, %cst_20 {dimension_numbers = #tpu.dot_dimension_numbers<[1], [0], [0], [1], [0, 0, 1, 1], [], []>} : vector<2x32xf32>, vector<32x128xf32>, vector<2x128xf32> -> vector<2x128xf32>
    %33 = arith.addf %15, %32 : vector<2x128xf32>
    %34 = vector.extract_strided_slice %33 {offsets = [0, 0], sizes = [2, 32], strides = [1, 1]} : vector<2x128xf32> to vector<2x32xf32>
    %35 = arith.negf %34 : vector<2x32xf32>
    %36 = math.exp %35 : vector<2x32xf32>
    %cst_21 = arith.constant 1.000000e+00 : f32
    %37 = vector.broadcast %cst_21 : f32 to vector<2x32xf32>
    %38 = arith.addf %37, %36 : vector<2x32xf32>
    %39 = arith.divf %37, %38 : vector<2x32xf32>
    %40 = vector.extract_strided_slice %33 {offsets = [0, 32], sizes = [2, 32], strides = [1, 1]} : vector<2x128xf32> to vector<2x32xf32>
    %41 = arith.negf %40 : vector<2x32xf32>
    %42 = math.exp %41 : vector<2x32xf32>
    %cst_22 = arith.constant 1.000000e+00 : f32
    %43 = vector.broadcast %cst_22 : f32 to vector<2x32xf32>
    %44 = arith.addf %43, %42 : vector<2x32xf32>
    %45 = arith.divf %43, %44 : vector<2x32xf32>
    %46 = vector.extract_strided_slice %33 {offsets = [0, 64], sizes = [2, 32], strides = [1, 1]} : vector<2x128xf32> to vector<2x32xf32>
    %47 = math.tanh %46 : vector<2x32xf32>
    %48 = vector.extract_strided_slice %33 {offsets = [0, 96], sizes = [2, 32], strides = [1, 1]} : vector<2x128xf32> to vector<2x32xf32>
    %49 = arith.negf %48 : vector<2x32xf32>
    %50 = math.exp %49 : vector<2x32xf32>
    %cst_23 = arith.constant 1.000000e+00 : f32
    %51 = vector.broadcast %cst_23 : f32 to vector<2x32xf32>
    %52 = arith.addf %51, %50 : vector<2x32xf32>
    %53 = arith.divf %51, %52 : vector<2x32xf32>
    %54 = arith.mulf %45, %8 : vector<2x32xf32>
    %55 = arith.mulf %39, %47 : vector<2x32xf32>
    %56 = arith.addf %54, %55 : vector<2x32xf32>
    %57 = math.tanh %56 : vector<2x32xf32>
    %58 = arith.mulf %53, %57 : vector<2x32xf32>
    %c0_24 = arith.constant 0 : index
    %c128 = arith.constant 128 : index
    %59 = vector.load %arg6[%c0_24, %c128] : memref<40x256xf32, #tpu.memory_space<vmem>>, vector<32x128xf32>
    %cst_25 = arith.constant dense<0.000000e+00> : vector<2x128xf32>
    %60 = tpu.matmul %58, %59, %cst_25 {dimension_numbers = #tpu.dot_dimension_numbers<[1], [0], [0], [1], [0, 0, 1, 1], [], []>} : vector<2x32xf32>, vector<32x128xf32>, vector<2x128xf32> -> vector<2x128xf32>
    %c32 = arith.constant 32 : index
    %c128_26 = arith.constant 128 : index
    %61 = vector.load %arg6[%c32, %c128_26] : memref<40x256xf32, #tpu.memory_space<vmem>>, vector<1x128xf32>
    %62 = vector.broadcast %61 : vector<1x128xf32> to vector<2x128xf32>
    %63 = arith.addf %60, %62 : vector<2x128xf32>
    %c0_27 = arith.constant 0 : index
    %c0_28 = arith.constant 0 : index
    %c0_29 = arith.constant 0 : index
    %64 = vector.load %arg7[%c0_27, %c0_28, %c0_29] : memref<1x2x128xf32, #tpu.memory_space<vmem>>, vector<1x2x128xf32>
    %65 = vector.shape_cast %64 : vector<1x2x128xf32> to vector<2x128xf32>
    %66 = vector.shape_cast %63 : vector<2x128xf32> to vector<1x2x128xf32>
    tpu.vector_store %arg7[%c0_27, %c0_28, %c0_29], %66 {strides = array<i32>} : memref<1x2x128xf32, #tpu.memory_space<vmem>>, vector<1x2x128xf32>,
    %c0_30 = arith.constant 0 : index
    %c0_31 = arith.constant 0 : index
    %c0_32 = arith.constant 0 : index
    %67 = vector.load %arg9[%c0_30, %c0_31, %c0_32] : memref<2x2x32xf32, #tpu.memory_space<vmem>>, vector<1x2x32xf32>
    %68 = vector.shape_cast %67 : vector<1x2x32xf32> to vector<2x32xf32>
    %69 = vector.shape_cast %58 : vector<2x32xf32> to vector<1x2x32xf32>
    tpu.vector_store %arg9[%c0_30, %c0_31, %c0_32], %69 {strides = array<i32>} : memref<2x2x32xf32, #tpu.memory_space<vmem>>, vector<1x2x32xf32>,
    %c1_33 = arith.constant 1 : index
    %c0_34 = arith.constant 0 : index
    %c0_35 = arith.constant 0 : index
    %70 = vector.load %arg9[%c1_33, %c0_34, %c0_35] : memref<2x2x32xf32, #tpu.memory_space<vmem>>, vector<1x2x32xf32>
    %71 = vector.shape_cast %70 : vector<1x2x32xf32> to vector<2x32xf32>
    %72 = vector.shape_cast %56 : vector<2x32xf32> to vector<1x2x32xf32>
    tpu.vector_store %arg9[%c1_33, %c0_34, %c0_35], %72 {strides = array<i32>} : memref<2x2x32xf32, #tpu.memory_space<vmem>>, vector<1x2x32xf32>,
    %c0_i32_36 = arith.constant 0 : i32
    %73 = arith.cmpi eq, %arg0, %c0_i32_36 : i32
    %74 = arith.extui %73 : i1 to i32
    %c0_i32_37 = arith.constant 0 : i32
    %75 = arith.cmpi ne, %74, %c0_i32_37 : i32
    scf.if %75 {
      %c0_38 = arith.constant 0 : index
      %c0_39 = arith.constant 0 : index
      %c0_40 = arith.constant 0 : index
      %76 = vector.load %arg8[%c0_38, %c0_39, %c0_40] : memref<2x2x32xf32, #tpu.memory_space<vmem>>, vector<1x2x32xf32>
      %77 = vector.shape_cast %76 : vector<1x2x32xf32> to vector<2x32xf32>
      %78 = vector.shape_cast %58 : vector<2x32xf32> to vector<1x2x32xf32>
      tpu.vector_store %arg8[%c0_38, %c0_39, %c0_40], %78 {strides = array<i32>} : memref<2x2x32xf32, #tpu.memory_space<vmem>>, vector<1x2x32xf32>,
      %c1_41 = arith.constant 1 : index
      %c0_42 = arith.constant 0 : index
      %c0_43 = arith.constant 0 : index
      %79 = vector.load %arg8[%c1_41, %c0_42, %c0_43] : memref<2x2x32xf32, #tpu.memory_space<vmem>>, vector<1x2x32xf32>
      %80 = vector.shape_cast %79 : vector<1x2x32xf32> to vector<2x32xf32>
      %81 = vector.shape_cast %56 : vector<2x32xf32> to vector<1x2x32xf32>
      tpu.vector_store %arg8[%c1_41, %c0_42, %c0_43], %81 {strides = array<i32>} : memref<2x2x32xf32, #tpu.memory_space<vmem>>, vector<1x2x32xf32>,
    } else {
    }
    return
  }
  func.func @transform_0(%arg0: i32) -> (i32, i32, i32) {
    %c0_i32 = arith.constant 0 : i32
    %c0_i32_0 = arith.constant 0 : i32
    %c0_i32_1 = arith.constant 0 : i32
    return %arg0, %c0_i32, %c0_i32_0 : i32, i32, i32
  }
  func.func @transform_1(%arg0: i32) -> (i32, i32) {
    %c0_i32 = arith.constant 0 : i32
    %c0_i32_0 = arith.constant 0 : i32
    %c0_i32_1 = arith.constant 0 : i32
    return %c0_i32, %c0_i32_0 : i32, i32
  }
  func.func @transform_2(%arg0: i32) -> (i32, i32) {
    %c0_i32 = arith.constant 0 : i32
    %c0_i32_0 = arith.constant 0 : i32
    %c0_i32_1 = arith.constant 0 : i32
    return %c0_i32, %c0_i32_0 : i32, i32
  }
  func.func @transform_3(%arg0: i32) -> (i32, i32, i32) {
    %c0_i32 = arith.constant 0 : i32
    %c0_i32_0 = arith.constant 0 : i32
    %c0_i32_1 = arith.constant 0 : i32
    %c0_i32_2 = arith.constant 0 : i32
    return %c0_i32, %c0_i32_0, %c0_i32_1 : i32, i32, i32
  }
  func.func @transform_4(%arg0: i32) -> (i32, i32) {
    %c0_i32 = arith.constant 0 : i32
    %c0_i32_0 = arith.constant 0 : i32
    %c0_i32_1 = arith.constant 0 : i32
    return %c0_i32, %c0_i32_0 : i32, i32
  }
  func.func @transform_5(%arg0: i32) -> (i32, i32) {
    %c0_i32 = arith.constant 0 : i32
    %c0_i32_0 = arith.constant 0 : i32
    %c0_i32_1 = arith.constant 0 : i32
    return %c0_i32, %c0_i32_0 : i32, i32
  }
  func.func @transform_6(%arg0: i32) -> (i32, i32, i32) {
    %c0_i32 = arith.constant 0 : i32
    %c0_i32_0 = arith.constant 0 : i32
    %c0_i32_1 = arith.constant 0 : i32
    return %arg0, %c0_i32, %c0_i32_0 : i32, i32, i32
  }
  func.func @transform_7(%arg0: i32) -> (i32, i32, i32) {
    %c0_i32 = arith.constant 0 : i32
    %c0_i32_0 = arith.constant 0 : i32
    %c0_i32_1 = arith.constant 0 : i32
    %c0_i32_2 = arith.constant 0 : i32
    return %c0_i32, %c0_i32_0, %c0_i32_1 : i32, i32, i32
  }
}

</mosaic_0001>

<bundles_post_ra>
// kernel: _decoder_forward_jit.1
= control target key start
LH: loop header
LB: loop body
LE: loop exit
PB: predicated region body
PF: predicated region fallthrough
CT: control target
= control target key end

     0   :  { %v642_v3 = vmov 0.0   ;;  %vm30_vm0 = vcmask 254976   ;;  %vm51_vm1 = vcmask 261120   ;;  %vm126_vm2 = vcmask 130048   ;;  %s646_s27 = smov 32   ;;  %s648_s11 = smov 96   ;;  %s837_s4 = inlined_call_operand.vmem [shape: f32[48,256], index: 4, kind: input, shape index: {}]   ;;  %s838_s1 = inlined_call_operand.vmem [shape: f32[2,32], index: 1, kind: input, shape index: {}]   ;;  %s839_s0 = inlined_call_operand.vmem [shape: f32[1,2,16], index: 0, kind: input, shape index: {}]   ;;  %s840_s3 = inlined_call_operand.vmem [shape: f32[2,32,96], index: 3, kind: input, shape index: {}]   ;;  %s841_s5 = inlined_call_operand.vmem [shape: f32[40,256], index: 5, kind: input, shape index: {}]   ;;  %s842_s2 = inlined_call_operand.vmem [shape: f32[2,32], index: 2, kind: input, shape index: {}]   ;;  %s843_s7 = inlined_call_operand.vmem [shape: f32[2,2,32], index: 7, kind: output, shape index: {1}]   ;;  %s844_s6 = inlined_call_operand.vmem [shape: f32[1,2,128], index: 6, kind: output, shape index: {0}]  }
   0x1   :  { %v44_v0 = vld [vmem:[%s837_s4 + $0x28] sm:$0xff]  ;;  %v46_v1 = vld [vmem:[%s837_s4 + $0x38] sm:$0xff]  ;;  %v43_v2 = vld [vmem:[%s837_s4 + $0x20] sm:$0xff]  ;;  %119 = vmatprep.mubr.f32.mxu0 %v642_v3  ;;  %vm201_vm3 = vcmask 779264   ;;  %v643_v41 = vmov 1966171168   ;;  %v233_v43 = vlaneseq }
   0x2   :  { %v597_v4 = vpack.c.bf16 %v46_v1, %v44_v0  ;;  %v45_v5 = vld [vmem:[%s837_s4 + $0x30] sm:$0xff]  ;;  %v48_v6 = vld [vmem:[%s837_s4 + $0x48] sm:$0xff]  ;;  %v50_v7 = vld [vmem:[%s837_s4 + $0x58] sm:$0xff]  ;;  %v231_v42 = vunpack.c.l.s4 %v643_v41  ;;  %vm270_vm4 = vcmask 785408   ;;  %vm645_vm5 = vmmov 0  }
   0x3   :  { %v599_v8 = vpack.c.bf16 %v45_v5, %v43_v2  ;;  %v601_v9 = vpack.c.bf16 %v50_v7, %v48_v6  ;;  %v47_v10 = vld [vmem:[%s837_s4 + $0x40] sm:$0xff]  ;;  %v49_v11 = vld [vmem:[%s837_s4 + $0x50] sm:$0xff]  ;;  %v40_v13 = vld [vmem:[%s837_s4 + $0x8] sm:$0xff]  ;;  %v738_v45 = vshrl.u32 %v233_v43, 7  ;;  %583 = vmatprep.mubr.msk.f32.mxu1 %vm645_vm5, %v642_v3  ;;  %vm318_vm6 = vcmask 130112  }
   0x4   :  { %v29_v12 = vld [vmem:[%s838_s1] sm:$0x3]  ;;  %598 = vmatprep.subr.bf16.mxu0 %v597_v4  ;;  %v42_v14 = vld [vmem:[%s837_s4 + $0x18] sm:$0xff]  ;;  %v603_v15 = vpack.c.bf16 %v49_v11, %v47_v10  ;;  %v41_v18 = vld [vmem:[%s837_s4 + $0x10] sm:$0xff]  ;;  %v232_v44 = vunpack.c.0.s8 %v231_v42  ;;  %vm325_vm7 = vcmask 195712   ;;  %vm332_vm8 = vcmask 261312  }
   0x5   :  { %31 = vst.msk [vmem:[#allocation2] sm:$0x3] %vm30_vm0, %v29_v12  ;;  %600 = vmatpush1.bf16.msra.mxu0 %v599_v8  ;;  %v605_v16 = vpack.c.bf16 %v42_v14, %v40_v13  ;;  %v39_v17 = vld [vmem:[%s837_s4] sm:$0xff]  ;;  %v254_v50 = vsub.s32 0, %v738_v45  ;;  %v222_v57 = vld [vmem:[%s840_s3 + $0x8] sm:$0xff]  ;;  %v223_v0 = vld [vmem:[%s840_s3 + $0x10] sm:$0xff] }
   0x6   :  { %602 = vmatprep.subr.bf16.mxu0 %v601_v9  ;;  %v607_v19 = vpack.c.bf16 %v41_v18, %v39_v17  ;;  %v35_v21 = vld [vmem:[%s839_s0] sm:$0x3]  ;;  %v235_v46 = vsub.s32 %v232_v44, %v738_v45  ;;  %v226_v60 = vld [vmem:[%s840_s3 + $0x28] sm:$0xff]  ;;  %v227_v4 = vld [vmem:[%s840_s3 + $0x30] sm:$0xff]  ;;  %vm353_vm9 = vcmask 1041409  }
   0x7   :  { %v221_v53 = vld [vmem:[%s840_s3] sm:$0xff]  ;;  %v224_v7 = vld [vmem:[%s840_s3 + $0x18] sm:$0xff]  ;;  %v296_v18 = vld [vmem:[%s841_s5 + $0x10] sm:$0xff] }
   0x8   :  { %v225_v56 = vld [vmem:[%s840_s3 + $0x20] sm:$0xff]  ;;  %v228_v10 = vld [vmem:[%s840_s3 + $0x38] sm:$0xff] }
   0x9   :  { %604 = vmatpush1.bf16.msra.mxu0 %v603_v15  ;;  %v295_v17 = vld [vmem:[%s841_s5] sm:$0xff] }
   0xa   :  { %606 = vmatprep.subr.bf16.mxu0 %v605_v16 }
   0xc   :  { %v36_v20 = vld [vmem:[#allocation2] sm:$0x3] }
   0xd   :  { %559 = vmatmul.mubr.msk.f32.vlgmr.msra.gmra.mrb[0].mxu0 %vm51_vm1, %v36_v20  ;;  %v644_v20 = vmov 0.0|0.0  }
   0xe   :  { %608 = vmatpush1.bf16.msra.mxu0 %v607_v19  ;;  %194 = vmatprep.mubr.f32.mxu0 %v642_v3  ;;  %v610_v19 = vpack.c.bf16 %v296_v18, %v295_v17  ;;  %v460_v18 = vld [vmem:[%s841_s5 + $0x48] ss:$0 sm:$0xff] }
   0xf   :  { %609 = vmatprep.subr.bf16.mxu1 %v644_v20 }
  0x10   :  { %611 = vmatpush3.bf16.msra.mxu1 %v610_v19 }
  0x11   :  { %612 = vmatprep.subr.bf16.mxu1 %v644_v20 }
  0x15   :  { %560 = vmatmul.mubr.msk.f32.vlgmr.msra.gmra.mrb[0].mxu0 %vm126_vm2, %v35_v21  ;;  %v297_v21 = vld [vmem:[%s841_s5 + $0x20] sm:$0xff] }
  0xe8   :  { %v196_v22 = vpop.f32.mrb[0].mxu0 }
  0xe9   :  { %v202_v23 = vsel %vm201_vm3, %v196_v22, -inf  ;;  %v735_v24 = vpop.f32.mrb[1].mxu0 }
  0xea   :  { %v203_v25 = vrot.slane %v202_v23, 4 }
  0xec   :  { %v204_v26 = vmax.f32 %v202_v23, %v203_v25  ;;  %v32_v25 = vld [vmem:[%s842_s2] sm:$0x3]  ;;  %s647_s2 = smov 64  }
  0xed   :  { %34 = vst.msk [vmem:[#allocation2 + $0x2] sm:$0x3] %vm30_vm0, %v32_v25 }
  0xee   :  { %v205_v27 = vrot.slane %v204_v26, 2 }
  0xf0   :  { %v206_v28 = vmax.f32 %v204_v26, %v205_v27 }
  0xf2   :  { %v207_v29 = vrot.slane %v206_v28, 1 }
  0xf4   :  { %v208_v30 = vmax.f32 %v206_v28, %v207_v29  ;;  %v38_v26 = vld [vmem:[#allocation2 + $0x2] sm:$0x3]  ;;  %v308_v28 = vand.u32 127, %v233_v43 }
  0xf6   :  { %v209_v31 = vsub.f32 %v196_v22, %v208_v30  ;;  %v298_v22 = vld [vmem:[%s841_s5 + $0x30] sm:$0xff]  ;;  %v313_v30 = vadd.s32 4294967288, %v308_v28 }
  0xf7   :  { %v613_v23 = vpack.c.bf16 %v298_v22, %v297_v21 }
  0xf8   :  { %v210_v32 = vmul.f32 1.442695, %v209_v31 }
  0xf9   :  { %614 = vmatpush3.bf16.msra.mxu1 %v613_v23 }
  0xfa   :  { %630 = vpow2.f32 %v210_v32  ;;  %615 = vmatprep.subr.bf16.mxu1 %v644_v20  ;;  %v320_v32 = vadd.s32 4294967280, %v308_v28 }
 0x104   :  { %v631_v33 = vpop.eup %630 }
 0x105   :  { %v212_v34 = vsel %vm201_vm3, %v631_v33, 0.0 }
 0x106   :  { %v213_v35 = vrot.slane %v212_v34, 4 }
 0x108   :  { %v214_v36 = vadd.f32 %v213_v35, %v212_v34  ;;  %v316_v35 = vsub.s32 %v313_v30, %v738_v45 }
 0x10a   :  { %v215_v37 = vrot.slane %v214_v36, 2 }
 0x10c   :  { %v216_v38 = vadd.f32 %v215_v37, %v214_v36  ;;  %v323_v36 = vsub.s32 %v320_v32, %v738_v45 }
 0x10e   :  { %v217_v39 = vrot.slane %v216_v38, 1 }
 0x110   :  { %v218_v40 = vadd.f32 %v217_v39, %v216_v38  ;;  %v311_v38 = vsub.s32 %v308_v28, %v738_v45 }
 0x112   :  { %632 = vrcp.f32 %v218_v40 }
 0x11c   :  { %v633_v47 = vpop.eup %632 }
 0x11d   :  { %v220_v48 = vmul.f32 %v633_v47, %v631_v33  ;;  %v327_v33 = vadd.s32 4294967272, %v308_v28 }
 0x11f   :  { %v236_v49 = vrot.slane %v220_v48, %v235_v46  ;;  %v330_v39 = vsub.s32 %v327_v33, %v738_v45 }
 0x121   :  { %v244_v51 = vrot.slane %v236_v49, %v235_v46  ;;  %v237_v52 = vcombine.high %v236_v49, %v236_v49 }
 0x123   :  { %v255_v54 = vrot.slane %v244_v51, %v254_v50  ;;  %v251_v55 = vrot.slane %v237_v52, %v235_v46 }
 0x125   :  { %v262_v58 = vmul.f32 %v255_v54, %v221_v53  ;;  %v259_v59 = vrot.slane %v251_v55, %v254_v50  ;;  %v263_v63 = vmul.f32 %v255_v54, %v222_v57  ;;  %v264_v6 = vmul.f32 %v255_v54, %v223_v0 }
 0x126   :  { %v265_v12 = vmul.f32 %v255_v54, %v224_v7 }
 0x127   :  { %v271_v61 = vsel %vm270_vm4, %v262_v58, 0.0  ;;  %v266_v62 = vmul.f32 %v259_v59, %v225_v56  ;;  %v267_v2 = vmul.f32 %v259_v59, %v226_v60  ;;  %v274_v5 = vsel %vm270_vm4, %v263_v63, 0.0 }
 0x128   :  { %272 = vadd.xlane.f32.xlu0 %v271_v61  ;;  %v268_v9 = vmul.f32 %v259_v59, %v227_v4  ;;  %v277_v11 = vsel %vm270_vm4, %v264_v6, 0.0  ;;  %v269_v14 = vmul.f32 %v259_v59, %v228_v10  ;;  %v280_v15 = vsel %vm270_vm4, %v265_v12, 0.0 }
 0x129   :  { %v283_v1 = vsel %vm270_vm4, %v266_v62, 0.0  ;;  %v286_v8 = vsel %vm270_vm4, %v267_v2, 0.0 }
 0x12a   :  { %284 = vadd.xlane.f32.xlu1 %v283_v1  ;;  %v289_v13 = vsel %vm270_vm4, %v268_v9, 0.0  ;;  %v292_v16 = vsel %vm270_vm4, %v269_v14, 0.0  ;;  %v458_v9 = vld [vmem:[%s841_s5 + $0x28] sm:$0xff] }
 0x12c   :  { %275 = vadd.xlane.f32.xlu0 %v274_v5 }
 0x12e   :  { %287 = vadd.xlane.f32.xlu1 %v286_v8  ;;  %v457_v8 = vld [vmem:[%s841_s5 + $0x18] sm:$0xff] }
 0x130   :  { %278 = vadd.xlane.f32.xlu0 %v277_v11  ;;  %v459_v11 = vld [vmem:[%s841_s5 + $0x38] sm:$0xff] }
 0x131   :  { %v619_v12 = vpack.c.bf16 %v459_v11, %v458_v9 }
 0x132   :  { %290 = vadd.xlane.f32.xlu1 %v289_v13 }
 0x134   :  { %281 = vadd.xlane.f32.xlu0 %v280_v15 }
 0x136   :  { %293 = vadd.xlane.f32.xlu1 %v292_v16 }
 0x147   :  { %436 = vrot.lane.b32.xlu1 %v38_v26, %s646_s27 }
 0x1b5   :  { %v273_v27 = vpop.xlane.xlu0 %272 }
 0x1b6   :  { %v312_v47 = vrot.slane %v273_v27, %v311_v38 }
 0x1b7   :  { %v285_v29 = vpop.xlane.xlu1 %284 }
 0x1b8   :  { %v337_v48 = vrot.slane %v285_v29, %v311_v38 }
 0x1b9   :  { %v276_v31 = vpop.xlane.xlu0 %275 }
 0x1ba   :  { %v317_v41 = vrot.slane %v276_v31, %v316_v35 }
 0x1bb   :  { %v288_v34 = vpop.xlane.xlu1 %287 }
 0x1bc   :  { %v341_v42 = vrot.slane %v288_v34, %v316_v35  ;;  %v319_v51 = vsel %vm318_vm6, %v317_v41, %v312_v47 }
 0x1bd   :  { %v279_v37 = vpop.xlane.xlu0 %278 }
 0x1be   :  { %v324_v43 = vrot.slane %v279_v37, %v323_v36  ;;  %v342_v52 = vsel %vm318_vm6, %v341_v42, %v337_v48 }
 0x1bf   :  { %v291_v40 = vpop.xlane.xlu1 %290 }
 0x1c0   :  { %v346_v44 = vrot.slane %v291_v40, %v323_v36  ;;  %v326_v54 = vsel %vm325_vm7, %v324_v43, %v319_v51 }
 0x1c1   :  { %v282_v46 = vpop.xlane.xlu0 %281 }
 0x1c2   :  { %v331_v49 = vrot.slane %v282_v46, %v330_v39  ;;  %v347_v55 = vsel %vm325_vm7, %v346_v44, %v342_v52 }
 0x1c3   :  { %v294_v50 = vpop.xlane.xlu1 %293 }
 0x1c4   :  { %v351_v53 = vrot.slane %v294_v50, %v330_v39  ;;  %v333_v45 = vsel %vm332_vm8, %v331_v49, %v326_v54 }
 0x1c6   :  { %v352_v56 = vsel %vm332_vm8, %v351_v53, %v347_v55 }
 0x1c7   :  { %v354_v57 = vsel %vm353_vm9, %v352_v56, %v333_v45  ;;  %v437_v5 = vpop.permute.xlu1 %436 }
 0x1c8   :  { %584 = vmatmul.mubr.msk.f32.vlgmr.msra.gmra.mrb[0].mxu1 %vm51_vm1, %v354_v57 }
 0x1c9   :  { %594 = vmatprep.mubr.msk.f32.mxu1 %vm645_vm5, %v642_v3 }
 0x29b   :  { %v423_v58 = vpop.f32.mrb[0].mxu1 }
 0x29c   :  { %v427_v59 = vadd.f32 %v423_v58, %v735_v24  ;;  %v585_v60 = vpop.f32.mrb[1].mxu1  ;;  %v456_v24 = vld [vmem:[%s841_s5 + $0x8] sm:$0xff] }
 0x29d   :  { %v616_v10 = vpack.c.bf16 %v457_v8, %v456_v24 }
 0x29e   :  { %634 = vtanh.f32 %v427_v59  ;;  %v562_v62 = vmul.f32 -1.442695, %v427_v59 }
 0x29f   :  { %617 = vmatpush3.bf16.msra.mxu1 %v616_v10 }
 0x2a0   :  { %636 = vpow2.f32 %v562_v62  ;;  %618 = vmatprep.subr.bf16.mxu1 %v644_v20 }
 0x2a3   :  { %620 = vmatpush3.bf16.msra.mxu1 %v619_v12 }
 0x2a8   :  { %v635_v61 = vpop.eup %634 }
 0x2a9   :  { %441 = vrot.lane.b32.xlu0 %v635_v61, %s647_s2 }
 0x2aa   :  { %v637_v63 = vpop.eup %636 }
 0x2ab   :  { %v431_v0 = vadd.f32 1.0, %v637_v63 }
 0x2ad   :  { %638 = vrcp.f32 %v431_v0 }
 0x2b7   :  { %v639_v1 = vpop.eup %638 }
 0x2b8   :  { %v439_v3 = vmul.f32 %v639_v1, %v437_v5 }
 0x31b   :  { %v442_v2 = vpop.permute.xlu0 %441 }
 0x31c   :  { %v444_v4 = vmul.f32 %v639_v1, %v442_v2 }
 0x31e   :  { %446 = vrot.lane.b32.xlu1 %v444_v4, %s646_s27 }
 0x390   :  { %v447_v6 = vpop.permute.xlu1 %446 }
 0x391   :  { %v449_v7 = vadd.f32 %v447_v6, %v439_v3 }
 0x393   :  { %640 = vtanh.f32 %v449_v7 }
 0x39d   :  { %v641_v13 = vpop.eup %640 }
 0x39e   :  { %452 = vrot.lane.b32.xlu1 %v641_v13, %s647_s2 }
 0x3a2   :  { %541 = vrot.lane.b32.xlu1 %v449_v7, %s648_s11 }
 0x410   :  { %v453_v14 = vpop.permute.xlu1 %452 }
 0x411   :  { %v455_v15 = vmul.f32 %v639_v1, %v453_v14 }
 0x413   :  { %462 = vrot.lane.b32.xlu0 %v455_v15, %s646_s27 }
 0x414   :  { %v542_v16 = vpop.permute.xlu1 %541 }
 0x415   :  { %544 = vst.msk [vmem:[#allocation2 + $0x2] sm:$0x3] %vm30_vm0, %v542_v16  ;;  %564 = vst.msk [vmem:[%s843_s7 + $0x2] sm:$0x3] %vm30_vm0, %v542_v16 }
 0x485   :  { %v463_v17 = vpop.permute.xlu0 %462 }
 0x486   :  { %539 = vst.msk [vmem:[#allocation2] sm:$0x3] %vm30_vm0, %v463_v17  ;;  %548 = vst.msk [vmem:[%s843_s7] sm:$0x3] %vm30_vm0, %v463_v17  ;;  %595 = vmatmul.mubr.msk.f32.vlgmr.msra.gmra.mrb[2].mxu1 %vm51_vm1, %v463_v17 }
 0x559   :  { %v532_v19 = vpop.f32.mrb[2].mxu1 }
 0x55a   :  { %v533_v20 = vadd.f32 %v532_v19, %v460_v18  ;;  %v596_v21 = vpop.f32.mrb[3].mxu1 }
 0x55c   :  { %536 = vst [vmem:[%s844_s6] sm:$0x3] %v533_v20 }

</bundles_post_ra>
